<compile_context>
chip_gen: v7x
topology: tpu7x:2x2x1
jax: 0.10.0
libtpu: 0.0.40
codegen_flags: <defaults>
</compile_context>

<pallas_src>
import jax
import jax.numpy as jnp
from jax.experimental import pallas as pl
from jax.experimental.pallas import tpu as pltpu


def _round_up(n, m):
    return ((n + m - 1) // m) * m


def _mlp_kernel(x_ref, w1_ref, shift_ref, w2_ref, b2_ref, o_ref):
    # fc1 (BN folded): (TB, F) @ (F, H) + (1, H)   -- bf16 operands, f32 acc
    h = jnp.dot(x_ref[...].astype(jnp.bfloat16), w1_ref[...],
                preferred_element_type=jnp.float32)
    h = h + shift_ref[...]
    # ReLU (f32 on the VPU)
    h = jnp.maximum(h, 0.0)
    # Dropout (eval) = identity
    # fc2: (TB, H) @ (H, Lp) + (1, Lp)  -- lane-dense padded output
    out = jnp.dot(h.astype(jnp.bfloat16), w2_ref[...],
                  preferred_element_type=jnp.float32)
    o_ref[...] = (out + b2_ref[...]).astype(o_ref.dtype)


def mlp_classifier_forward(x, params, *, block_b=256):
    """Fused eval-mode forward pass. x: (B, input_size) float32 -> (B, num_labels) f32."""
    eps = 1e-5

    # ---- Fold BatchNorm running stats into fc1 (trace-time, plain JAX glue) ----
    scale = params["gamma"] / jnp.sqrt(params["running_var"] + eps)      # (H,)
    shift = params["beta"] - params["running_mean"] * scale              # (H,)
    w1_folded = (params["w1"] * scale[None, :]).astype(jnp.bfloat16)     # (F, H) bf16
    shift_folded = (params["b1"] * scale + shift).astype(jnp.float32)    # (H,)

    B, F = x.shape
    H = params["w1"].shape[1]
    L = params["w2"].shape[1]

    # ---- Pad the tiny label dim to a lane-dense multiple of 128 ----
    LP = _round_up(max(L, 128), 128)
    w2_p = jnp.zeros((H, LP), jnp.bfloat16).at[:, :L].set(
        params["w2"].astype(jnp.bfloat16))
    b2_p = jnp.zeros((1, LP), jnp.float32).at[:, :L].set(
        params["b2"].reshape(1, L).astype(jnp.float32))
    shift_2d = shift_folded.reshape(1, H)

    # ---- Batch tiling: TB a multiple of 16 (bf16-friendly), pad B up to it ----
    tb = min(block_b, _round_up(B, 16))
    bp = _round_up(B, tb)
    x_p = x if bp == B else jnp.zeros((bp, F), x.dtype).at[:B, :].set(x)

    grid = (bp // tb,)
    resident = lambda shape: pl.BlockSpec(shape, lambda i: (0,) * len(shape))

    out_padded = pl.pallas_call(
        _mlp_kernel,
        out_shape=jax.ShapeDtypeStruct((bp, LP), jnp.float32),
        grid=grid,
        in_specs=[
            pl.BlockSpec((tb, F), lambda i: (i, 0)),   # x tile (pipelined)
            resident((F, H)),                          # folded w1 (bf16, resident)
            resident((1, H)),                          # folded shift (f32)
            resident((H, LP)),                         # padded w2 (bf16)
            resident((1, LP)),                         # padded b2 (f32)
        ],
        out_specs=pl.BlockSpec((tb, LP), lambda i: (i, 0)),
        compiler_params=pltpu.CompilerParams(
            dimension_semantics=("parallel",),         # v7x: split tiles across TCs
        ),
    )(x_p, w1_folded, shift_2d, w2_p, b2_p)

    return out_padded[:B, :L]


def _reference_forward_f32(x, params):
    eps = 1e-5
    h = x @ params["w1"] + params["b1"]
    h = (h - params["running_mean"]) / jnp.sqrt(params["running_var"] + eps)
    h = h * params["gamma"] + params["beta"]
    h = jnp.maximum(h, 0.0)
    return h @ params["w2"] + params["b2"]


def _reference_forward_bf16(x, params):
    """Reference mirroring the kernel's bf16-operand / f32-accumulate matmuls."""
    eps = 1e-5
    scale = params["gamma"] / jnp.sqrt(params["running_var"] + eps)
    shift = params["beta"] - params["running_mean"] * scale
    w1f = (params["w1"] * scale[None, :]).astype(jnp.bfloat16)
    shiftf = params["b1"] * scale + shift
    h = jnp.dot(x.astype(jnp.bfloat16), w1f,
                preferred_element_type=jnp.float32) + shiftf
    h = jnp.maximum(h, 0.0)
    out = jnp.dot(h.astype(jnp.bfloat16), params["w2"].astype(jnp.bfloat16),
                  preferred_element_type=jnp.float32) + params["b2"]
    return out


def init_params(key, input_size, hidden_size, num_labels):
    k1, k2, k3, k4, k5 = jax.random.split(key, 5)
    lim1 = 1.0 / jnp.sqrt(jnp.float32(input_size))
    lim2 = 1.0 / jnp.sqrt(jnp.float32(hidden_size))
    return {
        "w1": jax.random.uniform(k1, (input_size, hidden_size), jnp.float32, -lim1, lim1),
        "b1": jax.random.uniform(k2, (hidden_size,), jnp.float32, -lim1, lim1),
        "gamma": jnp.ones((hidden_size,), jnp.float32),
        "beta": jnp.zeros((hidden_size,), jnp.float32),
        # Non-trivial running stats so the BN fold is actually exercised.
        "running_mean": 0.1 * jax.random.normal(k3, (hidden_size,), jnp.float32),
        "running_var": jnp.abs(jax.random.normal(k4, (hidden_size,), jnp.float32)) + 0.5,
        "w2": jax.random.uniform(k5, (hidden_size, num_labels), jnp.float32, -lim2, lim2),
        "b2": jnp.zeros((num_labels,), jnp.float32),
    }


if __name__ == "__main__":
    # Small shapes consistent with the module (input_size/hidden_size are ctor args).
    B, INPUT, HIDDEN, LABELS = 64, 256, 128, 5

    key = jax.random.PRNGKey(0)
    kx, kp = jax.random.split(key)
    x = jax.random.normal(kx, (B, INPUT), jnp.float32)
    params = init_params(kp, INPUT, HIDDEN, LABELS)

    # block_b=32 so the batch grid has multiple steps and the pipeline is exercised.
    out = mlp_classifier_forward(x, params, block_b=32)
    out = jax.block_until_ready(out)

    ref_bf16 = _reference_forward_bf16(x, params)
    ref_f32 = _reference_forward_f32(x, params)

    assert out.shape == (B, LABELS), out.shape
    # Tight check against a reference using identical bf16/f32 mixed precision.
    assert jnp.allclose(out, ref_bf16, atol=2e-3, rtol=2e-3), \
        float(jnp.max(jnp.abs(out - ref_bf16)))
    # Looser sanity check against the pure-f32 PyTorch-equivalent math.
    assert jnp.allclose(out, ref_f32, atol=5e-2, rtol=5e-2), \
        float(jnp.max(jnp.abs(out - ref_f32)))

    print("KERNEL_OK")
</pallas_src>

<mosaic_0001>
module attributes {stable_mosaic.version = 11 : i64} {
  func.func @_mlp_kernel(%arg0: i32, %arg1: memref<32x256xf32, #tpu.memory_space<vmem>>, %arg2: memref<256x128xbf16, #tpu.memory_space<vmem>>, %arg3: memref<1x128xf32, #tpu.memory_space<vmem>>, %arg4: memref<128x128xbf16, #tpu.memory_space<vmem>>, %arg5: memref<1x128xf32, #tpu.memory_space<vmem>>, %arg6: memref<32x128xf32, #tpu.memory_space<vmem>>) attributes {dimension_semantics = [#tpu.dimension_semantics<parallel>], iteration_bounds = array<i64: 2>, scalar_prefetch = 0 : i64, scratch_operands = 0 : i64, tpu.core_type = #tpu.core_type<tc>, window_params = [{transform_indices = @transform_0, window_bounds = array<i64: 32, 256>}, {pipeline_mode = #tpu.pipeline_mode<synchronous>, transform_indices = @transform_1, window_bounds = array<i64: 256, 128>}, {pipeline_mode = #tpu.pipeline_mode<synchronous>, transform_indices = @transform_2, window_bounds = array<i64: 1, 128>}, {pipeline_mode = #tpu.pipeline_mode<synchronous>, transform_indices = @transform_3, window_bounds = array<i64: 128, 128>}, {pipeline_mode = #tpu.pipeline_mode<synchronous>, transform_indices = @transform_4, window_bounds = array<i64: 1, 128>}, {transform_indices = @transform_5, window_bounds = array<i64: 32, 128>}]} {
    %c0 = arith.constant 0 : index
    %c0_0 = arith.constant 0 : index
    %0 = vector.load %arg1[%c0, %c0_0] : memref<32x256xf32, #tpu.memory_space<vmem>>, vector<32x256xf32>
    %1 = arith.truncf %0 : vector<32x256xf32> to vector<32x256xbf16>
    %c0_1 = arith.constant 0 : index
    %c0_2 = arith.constant 0 : index
    %2 = vector.load %arg2[%c0_1, %c0_2] : memref<256x128xbf16, #tpu.memory_space<vmem>>, vector<256x128xbf16>
    %cst = arith.constant dense<0.000000e+00> : vector<32x128xf32>
    %3 = tpu.matmul %1, %2, %cst {dimension_numbers = #tpu.dot_dimension_numbers<[1], [0], [0], [1], [0, 0, 1, 1], [], []>} : vector<32x256xbf16>, vector<256x128xbf16>, vector<32x128xf32> -> vector<32x128xf32>
    %c0_3 = arith.constant 0 : index
    %c0_4 = arith.constant 0 : index
    %4 = vector.load %arg3[%c0_3, %c0_4] : memref<1x128xf32, #tpu.memory_space<vmem>>, vector<1x128xf32>
    %5 = vector.broadcast %4 : vector<1x128xf32> to vector<32x128xf32>
    %6 = arith.addf %3, %5 : vector<32x128xf32>
    %cst_5 = arith.constant 0.000000e+00 : f32
    %7 = vector.broadcast %cst_5 : f32 to vector<32x128xf32>
    %8 = arith.maximumf %6, %7 : vector<32x128xf32>
    %9 = arith.truncf %8 : vector<32x128xf32> to vector<32x128xbf16>
    %c0_6 = arith.constant 0 : index
    %c0_7 = arith.constant 0 : index
    %10 = vector.load %arg4[%c0_6, %c0_7] : memref<128x128xbf16, #tpu.memory_space<vmem>>, vector<128x128xbf16>
    %cst_8 = arith.constant dense<0.000000e+00> : vector<32x128xf32>
    %11 = tpu.matmul %9, %10, %cst_8 {dimension_numbers = #tpu.dot_dimension_numbers<[1], [0], [0], [1], [0, 0, 1, 1], [], []>} : vector<32x128xbf16>, vector<128x128xbf16>, vector<32x128xf32> -> vector<32x128xf32>
    %c0_9 = arith.constant 0 : index
    %c0_10 = arith.constant 0 : index
    %12 = vector.load %arg5[%c0_9, %c0_10] : memref<1x128xf32, #tpu.memory_space<vmem>>, vector<1x128xf32>
    %13 = vector.broadcast %12 : vector<1x128xf32> to vector<32x128xf32>
    %14 = arith.addf %11, %13 : vector<32x128xf32>
    %c0_11 = arith.constant 0 : index
    %c0_12 = arith.constant 0 : index
    %15 = vector.load %arg6[%c0_11, %c0_12] : memref<32x128xf32, #tpu.memory_space<vmem>>, vector<32x128xf32>
    tpu.vector_store %arg6[%c0_11, %c0_12], %14 {strides = array<i32>} : memref<32x128xf32, #tpu.memory_space<vmem>>, vector<32x128xf32>,
    return
  }
  func.func @transform_0(%arg0: i32) -> (i32, i32) {
    %c0_i32 = arith.constant 0 : i32
    %c0_i32_0 = arith.constant 0 : i32
    return %arg0, %c0_i32 : i32, i32
  }
  func.func @transform_1(%arg0: i32) -> (i32, i32) {
    %c0_i32 = arith.constant 0 : i32
    %c0_i32_0 = arith.constant 0 : i32
    %c0_i32_1 = arith.constant 0 : i32
    return %c0_i32, %c0_i32_0 : i32, i32
  }
  func.func @transform_2(%arg0: i32) -> (i32, i32) {
    %c0_i32 = arith.constant 0 : i32
    %c0_i32_0 = arith.constant 0 : i32
    %c0_i32_1 = arith.constant 0 : i32
    return %c0_i32, %c0_i32_0 : i32, i32
  }
  func.func @transform_3(%arg0: i32) -> (i32, i32) {
    %c0_i32 = arith.constant 0 : i32
    %c0_i32_0 = arith.constant 0 : i32
    %c0_i32_1 = arith.constant 0 : i32
    return %c0_i32, %c0_i32_0 : i32, i32
  }
  func.func @transform_4(%arg0: i32) -> (i32, i32) {
    %c0_i32 = arith.constant 0 : i32
    %c0_i32_0 = arith.constant 0 : i32
    %c0_i32_1 = arith.constant 0 : i32
    return %c0_i32, %c0_i32_0 : i32, i32
  }
  func.func @transform_5(%arg0: i32) -> (i32, i32) {
    %c0_i32 = arith.constant 0 : i32
    %c0_i32_0 = arith.constant 0 : i32
    return %arg0, %c0_i32 : i32, i32
  }
}

</mosaic_0001>

<bundles_post_ra>
// kernel: tpu_custom_call.1
= control target key start
LH: loop header
LB: loop body
LE: loop exit
PB: predicated region body
PF: predicated region fallthrough
CT: control target
= control target key end

     0   :  { %10 = vsyncpa [#allocation3], 0  ;;  %s1360_s0 = inlined_call_operand.hbm [shape: f32[64,256], index: 0, kind: input, shape index: {}]   ;;  %s1361_s1 = inlined_call_operand.hbm [shape: bf16[256,128], index: 1, kind: input, shape index: {}]   ;;  %s1362_s2 = inlined_call_operand.vmem [shape: f32[1,128], index: 2, kind: input, shape index: {}]   ;;  %s1363_s3 = inlined_call_operand.hbm [shape: bf16[128,128], index: 3, kind: input, shape index: {}]   ;;  %s1364_s4 = inlined_call_operand.vmem [shape: f32[1,128], index: 4, kind: input, shape index: {}]   ;;  %s1365_s5 = inlined_call_operand.hbm [shape: f32[64,128], index: 5, kind: output, shape index: {}]  }
   0x1   :  { %12 = vsyncpa [#allocation3 + $0x1], 0 }
   0x2   :  { %13 = vsyncpa [#allocation6], 0 }
   0x3   :  { %14 = vsyncpa [#allocation4], 0 }
   0x4   :  { %16 = vsyncpa [#allocation4 + $0x1], 0  ;;  %s1109_s18 = smov 0   ;;  %s1111_s19 = smov 0  }
   0x5   :  { %s1113_s20 = smov 0   ;;  %s1115_s21 = smov 0  }
   0x6 LB: > { %s1130_s22 = sadd.s32 4294967295, %s1067_s21   ;;  %s708_s23 = sadd.s32 4294967294, %s1067_s21   ;;  %s1067_s21 = sphi %s1115_s21, %s1385_s21   ;;  %s1063_s20 = sphi %s1113_s20, %s1384_s20   ;;  %s1059_s19 = sphi %s1111_s19, %s1383_s19   ;;  %s1055_s18 = sphi %s1109_s18, %s1382_s18  }
   0x7   : > { %p42_p0 = scmp.ne.s32.totalorder %s1059_s19, %s1055_s18  ;;  %p1366_p1 = scmp.eq.s32.totalorder %s1130_s22, 0 }
   0x8   : > { %p156_p3 = scmp.eq.s32.totalorder %s708_s23, 1  ;;  %p709_p5 = scmp.ge.s32.totalorder %s1067_s21, 1 }
   0x9   : > { %p1139_p4 = por %p1366_p1, %p42_p0  ;;  %p163_p7 = scmp.lt.s32.totalorder %s1067_s21, 3 }
   0xa   : > { %p1144_p6 = por %p156_p3, %p42_p0  ;;  %s1069_s27 = smov [#allocation5]  }
   0xb   : > { %s1369_s24 = scalar_select %p1139_p4, 1, 0 }
   0xc   : > { %s1370_s25 = scalar_select %p1144_p6, 1, 0 }
   0xd   : > { %p1149_p8 = pnand %p709_p5, %p163_p7  ;;  %s175_s28 = sshll.u32 %s1069_s27, 4  ;;  %s1153_s28 = int_to_ptr.vmem [resolvable:$true] %s175_s28 }
   0xe   : > { %s1070_s30 = smov [#allocation7]   ;;  %s911_s9 = scalar_lea.hbm %s1361_s1, 2048 }
   0xf   : > { %p826_p9 = pneg %p1149_p8  ;;  %s191_s6 = sshll.u32 %s1070_s30, 4  ;;  %s1164_s6 = int_to_ptr.vmem [resolvable:$true] %s191_s6 }
  0x10   : > { %p912_p12 = scmp.ne.s32.totalorder %s1361_s1, %s911_s9  ;;  %p918_p5 = scmp.lt.u32.totalorder %s911_s9, %s1361_s1 }
  0x11   : > { %p1160_p11 = pnand %p826_p9, %p1366_p1 }
  0x13   : > { %p913_p13 = pneg %p1160_p11 }
  0x15   : > { %p914_p0 = pnand %p913_p13, %p912_p12 }
  0x17   : > { %p915_p3 = pneg %p914_p0 }
  0x19   : > { %p920_p7 = pnand %p918_p5, %p915_p3 }
  0x1b   : > { %923 = shalt.err (!%p920_p7)
}
  0x1c   : > { %s924_s14 = scalar_lea.vmem %s1153_s28, 2048  ;;  %p932_p2 = scmp.lt.s32.totalorder %s1153_s28, %s1153_s28 }
  0x1d   : > { %p925_p9 = scmp.ne.s32.totalorder %s1153_s28, %s924_s14  ;;  %p933_p12 = scmp.lt.s32.totalorder %s924_s14, %s924_s14 }
  0x1f   : > { %p927_p10 = pnand %p925_p9, %p913_p13  ;;  %p934_p0 = por %p933_p12, %p932_p2 }
  0x21   : > { %p928_p1 = pneg %p927_p10 }
  0x23   : > { %p935_p6 = pnand %p934_p0, %p928_p1 }
  0x25   : > { %938 = shalt.err (!%p935_p6)
}
  0x26   : > { %s1071_s15 = smov 64   ;;  %s1072_s16 = smov 4  }
  0x27   : > { %829 = dma.hbm_to_vmem [thread:$0]  (!%p1160_p11), %s1361_s1, 2048, %s1153_s28, [#allocation6], %s1071_s15, %s1071_s15, %s1072_s16  }
  0x28   : > { %s939_s7 = scalar_lea.hbm %s1363_s3, 1024 }
  0x29   : > { %p940_p2 = scmp.ne.s32.totalorder %s1363_s3, %s939_s7  ;;  %p946_p10 = scmp.lt.u32.totalorder %s939_s7, %s1363_s3 }
  0x2b   : > { %p942_p1 = pnand %p940_p2, %p913_p13 }
  0x2d   : > { %p943_p6 = pneg %p942_p1 }
  0x2f   : > { %p948_p3 = pnand %p946_p10, %p943_p6 }
  0x31   : > { %951 = shalt.err (!%p948_p3)
}
  0x32   : > { %s952_s28 = scalar_lea.vmem %s1164_s6, 1024  ;;  %p960_p12 = scmp.lt.s32.totalorder %s1164_s6, %s1164_s6 }
  0x33   : > { %p953_p5 = scmp.ne.s32.totalorder %s1164_s6, %s952_s28  ;;  %p961_p0 = scmp.lt.s32.totalorder %s952_s28, %s952_s28 }
  0x35   : > { %p955_p7 = pnand %p953_p5, %p913_p13  ;;  %p962_p2 = por %p961_p0, %p960_p12 }
  0x37   : > { %p956_p9 = pneg %p955_p7 }
  0x39   : > { %p963_p1 = pnand %p962_p2, %p956_p9 }
  0x3b   : > { %966 = shalt.err (!%p963_p1)
}
  0x3c   : > { %832 = dma.hbm_to_vmem [thread:$0]  (!%p1160_p11), %s1363_s3, 1024, %s1164_s6, [#allocation6], %s1071_s15, %s1071_s15, %s1072_s16  }
  0x3d   : > { %s1219_s14 = sadd.s32 1, %s1067_s21   ;;  %s29_s29 = sadd.s32 1, %s1063_s20 }
  0x3e   : > { %s26_s17 = ssub.s32 %s1067_s21, %s1219_s14  ;;  %p36_p13 = scmp.ne.s32.totalorder %s1063_s20, %s1059_s19 }
  0x3f   : > { %p27_p6 = scmp.eq.s32.totalorder %s26_s17, 0  ;;  %p37_p10 = scmp.eq.s32.totalorder %s1067_s21, 0 }
  0x40   : > { %p1373_p3 = scmp.eq.s32.totalorder %s1130_s22, 1  ;;  %p843_p7 = scmp.lt.s32.totalorder %s1067_s21, 2 }
  0x41   : > { %s1235_s27 = scalar_select %p27_p6, %s1063_s20, %s29_s29  }
  0x42   : > { %p1229_p5 = por %p1373_p3, %p36_p13  ;;  %p38_p9 = por %p37_p10, %p36_p13 }
  0x43   : > { %s208_s30 = sand.u32 1, %s1063_s20   ;;  %s754_s6 = sshll.u32 %s1067_s21, 10 }
  0x44   : > { %s1374_s23 = scalar_select %p1229_p5, 1, 0 }
  0x45   : > { %s713_s7 = sshll.u32 %s208_s30, 6  ;;  %s1242_s8 = scalar_lea.hbm %s1360_s0, %s754_s6 }
  0x46   : > { %s212_s9 = scalar_lea.vmem [#allocation2], %s713_s7  ;;  %p1246_p11 = pnand %p843_p7, %p38_p9 }
  0x47   : > { %s220_s10 = sshll.u32 %s212_s9, 4  ;;  %s1250_s28 = scalar_lea.sflag [#allocation3], %s208_s30  ;;  %s1244_s10 = int_to_ptr.vmem [resolvable:$true] %s220_s10 }
  0x48   : > { %s967_s12 = scalar_lea.hbm %s1242_s8, 1024  ;;  %p969_p0 = pneg %p1246_p11 }
  0x49   : > { %p968_p12 = scmp.ne.s32.totalorder %s1242_s8, %s967_s12  ;;  %s972_s17 = scalar_lea.hbm %s1360_s0, 2048 }
  0x4a   : > { %p973_p13 = scmp.lt.u32.totalorder %s1242_s8, %s1360_s0  ;;  %p974_p6 = scmp.lt.u32.totalorder %s972_s17, %s967_s12 }
  0x4b   : > { %p970_p2 = pnand %p969_p0, %p968_p12  ;;  %p976_p3 = scmp.lt.u32.totalorder %s967_s12, %s1242_s8 }
  0x4c   : > { %p975_p10 = por %p974_p6, %p973_p13 }
  0x4d   : > { %p971_p1 = pneg %p970_p2 }
  0x4e   : > { %p977_p7 = por %p976_p3, %p975_p10 }
  0x50   : > { %p978_p9 = pnand %p977_p7, %p971_p1 }
  0x52   : > { %981 = shalt.err (!%p978_p9)
}
  0x53   : > { %s982_s30 = scalar_lea.vmem %s1244_s10, 1024  ;;  %s1073_s15 = smov [#allocation2]  }
  0x54   : > { %p983_p12 = scmp.ne.s32.totalorder %s1244_s10, %s982_s30  ;;  %s987_s16 = sshll.u32 %s1073_s15, 4  ;;  %s988_s16 = int_to_ptr.vmem [resolvable:$false] %s987_s16 }
  0x55   : > { %s989_s9 = scalar_lea.vmem %s988_s16, 2048  ;;  %p990_p4 = scmp.lt.s32.totalorder %s1244_s10, %s988_s16 }
  0x56   : > { %p985_p2 = pnand %p983_p12, %p969_p0  ;;  %p991_p13 = scmp.lt.s32.totalorder %s989_s9, %s982_s30 }
  0x58   : > { %p986_p5 = pneg %p985_p2  ;;  %p992_p6 = por %p991_p13, %p990_p4 }
  0x5a   : > { %p993_p10 = pnand %p992_p6, %p986_p5 }
  0x5c   : > { %996 = shalt.err (!%p993_p10)
}
  0x5d   : > { %s1074_s12 = smov 256   ;;  %s1075_s13 = smov 16  }
  0x5e   : > { %836 = dma.hbm_to_vmem [thread:$0]  (!%p1246_p11), %s1242_s8, 1024, %s1244_s10, %s1250_s28, %s1074_s12, %s1074_s12, %s1075_s13  }
  0x5f   : > { %232 = sbr.rel (%p1149_p8) target bundleno = 602 (0x25a), region = 40  ;;  %s1281_s29 = sand.u32 (!%p1149_p8), 1, %s1059_s19  }
  0x60   : > { %s718_s17 = sshll.u32 (!%p1149_p8), %s1281_s29, 6  ;;  %s235_s7 = scalar_lea.sflag (!%p1149_p8), [#allocation3], %s1281_s29 }
  0x61   : > { %s1285_s6 = scalar_lea.vmem (!%p1149_p8), [#allocation2], %s718_s17  ;;  %p1376_p4 = scmp.ne.s32.totalorder (!%p1149_p8), %s1369_s24, 0 }
  0x66   : > { %1042 = dma.done.wait (%p1376_p4), %s235_s7, 1024  }
  0x67   : > { %1044 = vsyncadd (%p1376_p4), %s235_s7, 4294966272  ;;  %p1377_p5 = scmp.eq.s32.totalorder %s1130_s22, 0 }
  0x69   : > { %1046 = dma.done.wait (%p1377_p5), [#allocation6], 3072   ;;  %p1378_p8 = pmov %p1377_p5 }
  0x6a   : > { %v887_v0 = vld [vmem:[#allocation5 + $0x40] sm:$0xff]   ;;  %v889_v2 = vld [vmem:[#allocation5 + $0x48] sm:$0xff]   ;;  %v891_v4 = vld [vmem:[#allocation5 + $0x50] sm:$0xff]   ;;  %s721_s8 = sshll.u32 %s1281_s29, 5  ;;  %s755_s15 = sshll.u32 %s1130_s22, 9 }
  0x6b   : > { %1048 = vsyncadd (%p1378_p8), [#allocation6], 4294964224  ;;  %v888_v1 = vld [vmem:[#allocation5] sm:$0xff]   ;;  %756 = vmatprep.subr.bf16.mxu0 %v887_v0  ;;  %v890_v3 = vld [vmem:[#allocation5 + $0x8] sm:$0xff]   ;;  %s272_s28 = scalar_lea.vmem [#allocation8], %s721_s8  ;;  %s1316_s12 = scalar_lea.hbm %s1365_s5, %s755_s15 }
  0x6c   : > { %757 = vmatpush3.bf16.msra.mxu0 %v888_v1  ;;  %v892_v5 = vld [vmem:[#allocation5 + $0x10] sm:$0xff]   ;;  %v893_v6 = vld [vmem:[#allocation5 + $0x58] sm:$0xff]   ;;  %v895_v8 = vld [vmem:[#allocation5 + $0x60] sm:$0xff]   ;;  %s616_s30 = sshll.u32 %s272_s28, 4  ;;  %s603_s22 = scalar_lea.sflag [#allocation4], %s1281_s29  ;;  %s1311_s30 = int_to_ptr.vmem [resolvable:$true] %s616_s30 }
  0x6d   : > { %758 = vmatprep.subr.bf16.mxu0 %v889_v2  ;;  %v894_v7 = vld [vmem:[#allocation5 + $0x18] sm:$0xff]   ;;  %v896_v9 = vld [vmem:[#allocation5 + $0x20] sm:$0xff]   ;;  %v897_v10 = vld [vmem:[#allocation5 + $0x68] sm:$0xff]   ;;  %s997_s13 = scalar_lea.vmem %s1311_s30, 512  ;;  %p1379_p0 = scmp.ne.s32.totalorder %s1374_s23, 0 }
  0x6e   : > { %v277_v11 = vld [vmem:[%s1285_s6 + $0x8] sm:$0xff]  ;;  %v279_v12 = vld [vmem:[%s1285_s6 + $0x18] sm:$0xff]  ;;  %v899_v15 = vld [vmem:[#allocation5 + $0x70] sm:$0xff]   ;;  %p998_p11 = scmp.ne.s32.totalorder %s1311_s30, %s997_s13  ;;  %s1076_s17 = smov [#allocation8]  }
  0x6f   : > { %v285_v13 = vpack.c.bf16 %v279_v12, %v277_v11  ;;  %v898_v14 = vld [vmem:[#allocation5 + $0x28] sm:$0xff]   ;;  %v903_v16 = vld [vmem:[#allocation7] sm:$0xff]   ;;  %v900_v18 = vld [vmem:[#allocation5 + $0x30] sm:$0xff]   ;;  %s1001_s7 = sshll.u32 %s1076_s17, 4  ;;  %s1002_s7 = int_to_ptr.vmem [resolvable:$false] %s1001_s7 }
  0x70   : > { %759 = vmatpush3.bf16.msra.mxu0 %v890_v3  ;;  %v904_v17 = vld [vmem:[#allocation7 + $0x8] sm:$0xff]   ;;  %794 = vmatprep.subr.bf16.mxu1 %v903_v16  ;;  %v905_v19 = vld [vmem:[#allocation7 + $0x10] sm:$0xff]   ;;  %v901_v20 = vld [vmem:[#allocation5 + $0x78] sm:$0xff]   ;;  %p999_p1 = pnand %p998_p11, %p1379_p0  ;;  %p1004_p7 = scmp.lt.s32.totalorder %s1311_s30, %s1002_s7 }
  0x71   : > { %760 = vmatprep.subr.bf16.mxu0 %v891_v4  ;;  %455 = vmatprep.mubr.bf16.mxu0 %v285_v13  ;;  %v902_v21 = vld [vmem:[#allocation5 + $0x38] sm:$0xff]   ;;  %v276_v22 = vld [vmem:[%s1285_s6] sm:$0xff]  ;;  %v278_v23 = vld [vmem:[%s1285_s6 + $0x10] sm:$0xff] }
  0x72   : > { %795 = vmatpush3.bf16.msra.mxu1 %v903_v16  ;;  %v281_v24 = vld [vmem:[%s1285_s6 + $0x28] sm:$0xff]  ;;  %v283_v25 = vld [vmem:[%s1285_s6 + $0x38] sm:$0xff]  ;;  %v284_v26 = vpack.c.bf16 %v278_v23, %v276_v22  ;;  %v280_v28 = vld [vmem:[%s1285_s6 + $0x20] sm:$0xff]  ;;  %p1000_p3 = pneg %p999_p1 }
  0x73   : > { %796 = vmatprep.subr.bf16.mxu1 %v904_v17  ;;  %v287_v27 = vpack.c.bf16 %v283_v25, %v281_v24  ;;  %v282_v29 = vld [vmem:[%s1285_s6 + $0x30] sm:$0xff]  ;;  %v906_v31 = vld [vmem:[#allocation7 + $0x18] sm:$0xff]   ;;  %v907_v32 = vld [vmem:[#allocation7 + $0x20] sm:$0xff]   ;;  %s1003_s6 = scalar_lea.vmem %s1002_s7, 1024 }
  0x74   : > { %761 = vmatpush3.bf16.msra.mxu0 %v892_v5  ;;  %v286_v30 = vpack.c.bf16 %v282_v29, %v280_v28  ;;  %v908_v33 = vld [vmem:[#allocation7 + $0x28] sm:$0xff]   ;;  %v909_v34 = vld [vmem:[#allocation7 + $0x30] sm:$0xff]   ;;  %v910_v35 = vld [vmem:[#allocation7 + $0x38] sm:$0xff]   ;;  %p1005_p9 = scmp.lt.s32.totalorder %s1003_s6, %s997_s13 }
  0x75   : > { %762 = vmatprep.subr.bf16.mxu0 %v893_v6  ;;  %v722_v38 = vld [vmem:[%s1362_s2] ss:$0 sm:$0xff] }
  0x76   : > { %797 = vmatpush3.bf16.msra.mxu1 %v904_v17  ;;  %v739_v59 = vld [vmem:[%s1364_s4] ss:$0 sm:$0xff]  ;;  %p1006_p12 = por %p1005_p9, %p1004_p7 }
  0x77   : > { %798 = vmatprep.subr.bf16.mxu1 %v905_v19 }
  0x78   : > { %763 = vmatpush3.bf16.msra.mxu0 %v894_v7  ;;  %p1007_p2 = pnand %p1006_p12, %p1000_p3 }
  0x79   : > { %764 = vmatprep.subr.bf16.mxu0 %v895_v8 }
  0x7a   : > { %799 = vmatpush3.bf16.msra.mxu1 %v905_v19 }
  0x7b   : > { %800 = vmatprep.subr.bf16.mxu1 %v906_v31 }
  0x7c   : > { %765 = vmatpush3.bf16.msra.mxu0 %v896_v9 }
  0x7d   : > { %766 = vmatprep.subr.bf16.mxu0 %v897_v10 }
  0x7e   : > { %801 = vmatpush3.bf16.msra.mxu1 %v906_v31 }
  0x7f   : > { %802 = vmatprep.subr.bf16.mxu1 %v907_v32 }
  0x80   : > { %767 = vmatpush3.bf16.msra.mxu0 %v898_v14 }
  0x81   : > { %768 = vmatprep.subr.bf16.mxu0 %v899_v15 }
  0x82   : > { %803 = vmatpush3.bf16.msra.mxu1 %v907_v32 }
  0x83   : > { %804 = vmatprep.subr.bf16.mxu1 %v908_v33 }
  0x84   : > { %769 = vmatpush3.bf16.msra.mxu0 %v900_v18 }
  0x85   : > { %770 = vmatprep.subr.bf16.mxu0 %v901_v20 }
  0x86   : > { %805 = vmatpush3.bf16.msra.mxu1 %v908_v33 }
  0x87   : > { %806 = vmatprep.subr.bf16.mxu1 %v909_v34 }
  0x88   : > { %771 = vmatpush3.bf16.msra.mxu0 %v902_v21 }
  0x8a   : > { %807 = vmatpush3.bf16.msra.mxu1 %v909_v34 }
  0x8b   : > { %456 = vmatmul.mubr.bf16.vlgmr.msra.gmra.mrb[0].mxu0 %v284_v26  ;;  %808 = vmatprep.subr.bf16.mxu1 %v910_v35 }
  0x8c   : > { %463 = vmatprep.mubr.bf16.mxu0 %v287_v27 }
  0x8e   : > { %809 = vmatpush3.bf16.msra.mxu1 %v910_v35 }
  0x93   : > { %464 = vmatmul.mubr.bf16.gmra.mrb[4].mxu0 %v286_v30 }
 0x15e   : > { %v772_v36 = vpop.f32.mrb[0].mxu0 }
 0x15f   : > { %v773_v37 = vpop.f32.mrb[1].mxu0 }
 0x160   : > { %v774_v39 = vadd.f32 %v773_v37, %v772_v36  ;;  %v775_v40 = vpop.f32.mrb[2].mxu0 }
 0x161   : > { %v776_v41 = vpop.f32.mrb[3].mxu0 }
 0x162   : > { %v777_v42 = vadd.f32 %v776_v41, %v775_v40  ;;  %v458_v43 = vadd.f32 %v774_v39, %v722_v38 }
 0x164   : > { %v461_v44 = vadd.f32 %v777_v42, %v722_v38  ;;  %v472_v46 = vmax.f32 %v458_v43, 0.0 }
 0x166   : > { %v778_v45 = vpop.f32.mrb[4].mxu0  ;;  %v473_v47 = vmax.f32 %v461_v44, 0.0 }
 0x167   : > { %v779_v48 = vpop.f32.mrb[5].mxu0 }
 0x168   : > { %v780_v49 = vadd.f32 %v779_v48, %v778_v45  ;;  %v781_v50 = vpop.f32.mrb[6].mxu0  ;;  %v476_v51 = vpack.c.bf16 %v473_v47, %v472_v46 }
 0x169   : > { %v782_v52 = vpop.f32.mrb[7].mxu0 }
 0x16a   : > { %v466_v53 = vadd.f32 %v780_v49, %v722_v38  ;;  %v783_v54 = vadd.f32 %v782_v52, %v781_v50  ;;  %810 = vmatprep.mubr.bf16.mxu1 %v476_v51 }
 0x16c   : > { %v469_v55 = vadd.f32 %v783_v54, %v722_v38  ;;  %v474_v56 = vmax.f32 %v466_v53, 0.0 }
 0x16e   : > { %v475_v57 = vmax.f32 %v469_v55, 0.0 }
 0x170   : > { %v477_v58 = vpack.c.bf16 %v475_v57, %v474_v56 }
 0x172   : > { %811 = vmatmul.mubr.bf16.vlgmr.msra.gmra.mrb[0].mxu1 %v477_v58 }
 0x245   : > { %v812_v60 = vpop.f32.mrb[0].mxu1 }
 0x246   : > { %v592_v61 = vadd.f32 %v812_v60, %v739_v59  ;;  %v583_v62 = vpop.f32.mrb[1].mxu1 }
 0x247   : > { %v584_v63 = vadd.f32 %v739_v59, %v583_v62  ;;  %v813_v0 = vpop.f32.mrb[2].mxu1 }
 0x248   : > { %600 = vst [vmem:[%s272_s28 + $0x10] sm:$0xff] %v592_v61  ;;  %v595_v1 = vadd.f32 %v813_v0, %v739_v59  ;;  %v586_v2 = vpop.f32.mrb[3].mxu1 }
 0x249   : > { %598 = vst [vmem:[%s272_s28] sm:$0xff] %v584_v63  ;;  %v587_v3 = vadd.f32 %v739_v59, %v586_v2 }
 0x24a   : > { %601 = vst [vmem:[%s272_s28 + $0x18] sm:$0xff] %v595_v1 }
 0x24b   : > { %599 = vst [vmem:[%s272_s28 + $0x8] sm:$0xff] %v587_v3 }
 0x24c   : > { %1010 = shalt.err (!%p1007_p2)
}
 0x24d   : > { %s1011_s24 = scalar_lea.hbm %s1316_s12, 512  ;;  %s1015_s10 = scalar_lea.hbm %s1365_s5, 1024 }
 0x24e   : > { %p1012_p13 = scmp.ne.s32.totalorder %s1316_s12, %s1011_s24  ;;  %p1016_p4 = scmp.lt.u32.totalorder %s1316_s12, %s1365_s5 }
 0x24f   : > { %p1017_p5 = scmp.lt.u32.totalorder %s1015_s10, %s1011_s24  ;;  %p1019_p11 = scmp.lt.u32.totalorder %s1011_s24, %s1316_s12 }
 0x250   : > { %p1013_p6 = pnand %p1012_p13, %p1379_p0 }
 0x251   : > { %p1018_p8 = por %p1017_p5, %p1016_p4 }
 0x252   : > { %p1014_p10 = pneg %p1013_p6 }
 0x253   : > { %p1020_p1 = por %p1019_p11, %p1018_p8 }
 0x255   : > { %p1021_p3 = pnand %p1020_p1, %p1014_p10 }
 0x257   : > { %1024 = shalt.err (!%p1021_p3)
}
 0x258   : > { %s1077_s15 = smov 128   ;;  %s1078_s16 = smov 8  }
 0x259   : > { %824 = dma.vmem_to_hbm [thread:$0]  (%p1379_p0), %s1311_s30, 512, %s1316_s12, %s603_s22, %s1077_s15, %s1077_s15, %s1078_s16  }
 0x25a PF: > { %s631_s9 = sand.u32 1, %s1055_s18   ;;  %p1380_p7 = scmp.ne.s32.totalorder %s1370_s25, 0 }
 0x25b   : > { %p1381_p9 = scmp.ge.s32.totalorder %s1067_s21, 2  ;;  %s632_s13 = scalar_lea.sflag [#allocation4], %s631_s9 }
 0x25d   : > { %p838_p12 = pnand %p1381_p9, %p1380_p7 }
 0x25f   : > { %1050 = dma.done.wait (!%p838_p12), %s632_s13, 512  }
 0x260   : > { %1052 = vsyncadd (!%p838_p12), %s632_s13, 4294966784  ;;  %p19_p2 = scmp.ge.s32.totalorder %s1219_s14, 4   ;;  %s1382_s18 = smov %s1059_s19 }
 0x261   : > { %s1383_s19 = smov %s1063_s20  ;;  %s1384_s20 = smov %s1235_s27 }
 0x262   : > { %s1385_s21 = smov %s1219_s14  ;;  %21 = sbr.rel (!%p19_p2) target bundleno = 6 (0x6), region = 93 }
 0x269   :  { %637 = vsyncpa [#allocation3], 1 }
 0x26a   :  { %639 = vsyncpa [#allocation3 + $0x1], 1 }
 0x26b   :  { %640 = vsyncpa [#allocation6], 1 }
 0x26c   :  { %641 = vsyncpa [#allocation4], 1 }
 0x26d   :  { %643 = vsyncpa [#allocation4 + $0x1], 1 }

</bundles_post_ra>
